<compile_context>
chip_gen: v6e
topology: v6e:2x2x1
jax: 0.10.0
libtpu: 0.0.40
codegen_flags: <defaults>
</compile_context>

<pallas_src>
import jax
import jax.numpy as jnp
from jax.experimental import pallas as pl
from jax.experimental.pallas import tpu as pltpu

LANE = 128        # TPU lane width
SUBLANE = 8       # f32 sublane width
MAX_TILE_B = 1024  # batch-tile cap (>=512 already ~85% of HBM roofline)


def _round_up(x, m):
    return pl.cdiv(x, m) * m


def _vmem_budget_bytes():
    # Physical per-core VMEM (128 MiB on v5e/v6e, 64 MiB on v7x); conservative
    # fallback if the query is unavailable.
    try:
        return int(pltpu.get_tpu_info().vmem_capacity_bytes)
    except Exception:
        return 64 << 20


# ---------------------------------------------------------------------------
# Fast path: both weight matrices VMEM-resident, batch streamed.
# ---------------------------------------------------------------------------
def _mlp_kernel_resident(x_ref, w1_ref, b1_ref, w2_ref, b2_ref, out_ref):
    # fc1: (TILE_B, In) @ (In, H), f32 accumulate on the MXU.
    h = jnp.dot(x_ref[...], w1_ref[...], preferred_element_type=jnp.float32)
    h = jnp.maximum(h + b1_ref[...], 0.0)            # bias kept (1, H), no pre-broadcast
    # fc2: (TILE_B, H) @ (H, Out)
    o = jnp.dot(h.astype(w2_ref.dtype), w2_ref[...],
                preferred_element_type=jnp.float32)
    out_ref[...] = (o + b2_ref[...]).astype(out_ref.dtype)


# ---------------------------------------------------------------------------
# Fallback path: weights too large for VMEM -> tile hidden (j) and input (k)
# reduction axes with VMEM accumulators.  grid = (batch, hidden_tiles, in_tiles),
# k innermost.  x is re-streamed once per hidden tile (acceptable fallback cost).
# ---------------------------------------------------------------------------
def _mlp_kernel_tiled(x_ref, w1_ref, b1_ref, w2_ref, b2_ref, out_ref,
                      h_acc, o_acc):
    j = pl.program_id(1)
    k = pl.program_id(2)
    nj = pl.num_programs(1)
    nk = pl.num_programs(2)

    @pl.when(jnp.logical_and(j == 0, k == 0))
    def _():
        o_acc[...] = jnp.zeros_like(o_acc)

    @pl.when(k == 0)
    def _():
        h_acc[...] = jnp.zeros_like(h_acc)

    h_acc[...] += jnp.dot(x_ref[...], w1_ref[...],
                          preferred_element_type=jnp.float32)

    @pl.when(k == nk - 1)
    def _():
        h = jnp.maximum(h_acc[...] + b1_ref[...], 0.0)
        o_acc[...] += jnp.dot(h.astype(w2_ref.dtype), w2_ref[...],
                              preferred_element_type=jnp.float32)

    @pl.when(jnp.logical_and(j == nj - 1, k == nk - 1))
    def _():
        out_ref[...] = (o_acc[...] + b2_ref[...]).astype(out_ref.dtype)


# ---------------------------------------------------------------------------
# Wrapper: prepare (pad/cast) parameters ONCE, return a jitted forward(x).
# ---------------------------------------------------------------------------
def make_net_forward(w1, b1, w2, b2, *, compute_dtype=jnp.float32,
                     out_dtype=jnp.float32, tile_b=None,
                     tile_in=None, tile_h=None, force_tiled=False):
    In, H = w1.shape
    H2, Out = w2.shape
    assert H2 == H
    b1 = jnp.asarray(b1, jnp.float32).reshape(1, H)
    b2 = jnp.asarray(b2, jnp.float32).reshape(1, Out)

    itemsize = jnp.dtype(compute_dtype).itemsize
    out_itemsize = jnp.dtype(out_dtype).itemsize
    budget = _vmem_budget_bytes()

    # Lane-dense output only when padding costs <= 2x writeback (Out >= 64);
    # otherwise use the full (unpadded) Out as the output block's last dim.
    out_lane = _round_up(Out, LANE)
    pad_out = (out_lane != Out) and (out_lane <= 2 * Out)
    out_cols = out_lane if pad_out else Out
    if pad_out:
        w2 = jnp.pad(w2, ((0, 0), (0, out_cols - Out)))
        b2 = jnp.pad(b2, ((0, 0), (0, out_cols - Out)))

    # Strategy: weights resident in VMEM (fast path) unless they are too large
    # for ~25% of the per-generation VMEM budget each.
    resident = (not force_tiled
                and In * H * itemsize <= budget // 4
                and H * out_cols * itemsize <= budget // 4)

    if resident:
        in_pad, h_pad = In, H
        tile_in, tile_h = In, H
    else:
        if tile_in is None:
            tile_in = min(_round_up(In, LANE), 512)
        if tile_h is None:
            tile_h = min(_round_up(H, LANE), 512)
        in_pad = _round_up(In, tile_in)
        h_pad = _round_up(H, tile_h)
        if in_pad != In:                      # zero K-pad: contributes nothing
            w1 = jnp.pad(w1, ((0, in_pad - In), (0, 0)))
        if h_pad != H:                        # zero H-pad: relu(0)=0, w2 rows 0
            w1 = jnp.pad(w1, ((0, 0), (0, h_pad - H)))
            b1 = jnp.pad(b1, ((0, 0), (0, h_pad - H)))
            w2 = jnp.pad(w2, ((0, h_pad - H), (0, 0)))

    # One-time casts (hoisted out of the per-call path).
    w1c = jnp.asarray(w1, compute_dtype)
    w2c = jnp.asarray(w2, compute_dtype)
    b1c = b1
    b2c = b2

    def forward(x):
        B, in_dim = x.shape
        if in_dim != In:
            raise ValueError(f"expected input size {In}, got {in_dim}")

        # Balanced batch tiles: multiple of 8, capped, no near-whole-tile
        # overshoot, and >=2 grid steps when there is enough work (v7x 2 TCs).
        tb = tile_b
        if tb is None:
            n_tiles = pl.cdiv(B, MAX_TILE_B)
            if B >= 256:
                n_tiles = max(n_tiles, 2)
            tb = max(SUBLANE, _round_up(pl.cdiv(B, n_tiles), SUBLANE))
        b_pad = _round_up(B, tb)

        xp = x.astype(compute_dtype)
        if b_pad != B or in_pad != In:
            xp = jnp.pad(xp, ((0, b_pad - B), (0, in_pad - In)))
        nb = b_pad // tb

        if resident:
            grid = (nb,)
            in_specs = [
                # streamed per grid step (double-buffered by the pipeline)
                pl.BlockSpec((tb, in_pad), lambda i: (i, 0)),
                # constant index_map -> VMEM-resident; single-buffered
                pl.BlockSpec((in_pad, h_pad), lambda i: (0, 0),
                             pipeline_mode=pl.Buffered(1)),
                pl.BlockSpec((1, h_pad), lambda i: (0, 0),
                             pipeline_mode=pl.Buffered(1)),
                pl.BlockSpec((h_pad, out_cols), lambda i: (0, 0),
                             pipeline_mode=pl.Buffered(1)),
                pl.BlockSpec((1, out_cols), lambda i: (0, 0),
                             pipeline_mode=pl.Buffered(1)),
            ]
            out_spec = pl.BlockSpec((tb, out_cols), lambda i: (i, 0))
            scratch = []
            kernel = _mlp_kernel_resident
            dims = ("parallel",)
            vmem_need = (2 * tb * in_pad * itemsize
                         + in_pad * h_pad * itemsize
                         + h_pad * out_cols * itemsize
                         + (h_pad + out_cols) * 4
                         + 2 * tb * out_cols * out_itemsize)
        else:
            nj = h_pad // tile_h
            nk = in_pad // tile_in
            grid = (nb, nj, nk)
            in_specs = [
                pl.BlockSpec((tb, tile_in), lambda i, j, k: (i, k)),
                pl.BlockSpec((tile_in, tile_h), lambda i, j, k: (k, j)),
                pl.BlockSpec((1, tile_h), lambda i, j, k: (0, j)),
                pl.BlockSpec((tile_h, out_cols), lambda i, j, k: (j, 0)),
                pl.BlockSpec((1, out_cols), lambda i, j, k: (0, 0),
                             pipeline_mode=pl.Buffered(1)),
            ]
            out_spec = pl.BlockSpec((tb, out_cols), lambda i, j, k: (i, 0))
            scratch = [pltpu.VMEM((tb, tile_h), jnp.float32),
                       pltpu.VMEM((tb, out_cols), jnp.float32)]
            kernel = _mlp_kernel_tiled
            dims = ("parallel", "arbitrary", "arbitrary")
            vmem_need = (2 * tb * tile_in * itemsize
                         + 2 * tile_in * tile_h * itemsize
                         + 2 * tile_h * out_cols * itemsize
                         + 2 * tile_h * 4 + out_cols * 4
                         + 2 * tb * out_cols * out_itemsize
                         + tb * tile_h * 4 + tb * out_cols * 4)

        vmem_limit = int(min(max(int(vmem_need * 1.5) + (4 << 20), 32 << 20),
                             budget))

        cost = pl.CostEstimate(
            flops=2 * b_pad * (in_pad * h_pad + h_pad * out_cols),
            transcendentals=0,
            bytes_accessed=int(b_pad * in_pad * itemsize
                               + in_pad * h_pad * itemsize
                               + h_pad * out_cols * itemsize
                               + (h_pad + out_cols) * 4
                               + b_pad * out_cols * out_itemsize),
        )

        out = pl.pallas_call(
            kernel,
            out_shape=jax.ShapeDtypeStruct((b_pad, out_cols), out_dtype),
            grid=grid,
            in_specs=in_specs,
            out_specs=out_spec,
            scratch_shapes=scratch,
            compiler_params=pltpu.CompilerParams(
                dimension_semantics=dims,
                vmem_limit_bytes=vmem_limit,
            ),
            cost_estimate=cost,
        )(xp, w1c, b1c, w2c, b2c)

        return out[:B, :Out]

    return jax.jit(forward)


def init_params(key, input_size, hidden_size, output_size):
    # Mirror nn.Linear default init: U(-1/sqrt(fan_in), 1/sqrt(fan_in)).
    k1, k2, k3, k4 = jax.random.split(key, 4)
    bound1 = 1.0 / jnp.sqrt(input_size)
    bound2 = 1.0 / jnp.sqrt(hidden_size)
    w1 = jax.random.uniform(k1, (input_size, hidden_size), jnp.float32, -bound1, bound1)
    b1 = jax.random.uniform(k2, (1, hidden_size), jnp.float32, -bound1, bound1)
    w2 = jax.random.uniform(k3, (hidden_size, output_size), jnp.float32, -bound2, bound2)
    b2 = jax.random.uniform(k4, (1, output_size), jnp.float32, -bound2, bound2)
    return w1, b1, w2, b2


if __name__ == "__main__":
    key = jax.random.PRNGKey(0)
    kx1, kp1, kx2, kp2 = jax.random.split(key, 4)

    # Case 1: small MLP, f32, resident-weight fast path; tile_b=8 -> 2 grid
    # steps so the single-buffered resident weights are reused across steps.
    batch, input_size, hidden_size, output_size = 16, 16, 32, 4
    x = jax.random.normal(kx1, (batch, input_size), jnp.float32)
    w1, b1, w2, b2 = init_params(kp1, input_size, hidden_size, output_size)
    fwd = make_net_forward(w1, b1, w2, b2, tile_b=8)
    out = jax.block_until_ready(fwd(x))
    ref = jnp.maximum(x @ w1 + b1, 0.0) @ w2 + b2
    assert out.shape == (batch, output_size)
    assert jnp.allclose(out, ref, atol=1e-5, rtol=1e-5), "f32 resident path mismatch"

    # Case 2: force the reduction-tiled fallback (grid over hidden/input tiles)
    # to exercise the accumulator kernel at small-but-tileable shapes.
    B2, In2, H2, Out2 = 32, 256, 256, 4
    x2 = jax.random.normal(kx2, (B2, In2), jnp.float32)
    w1b, b1b, w2b, b2b = init_params(kp2, In2, H2, Out2)
    fwd2 = make_net_forward(w1b, b1b, w2b, b2b,
                            force_tiled=True, tile_in=128, tile_h=128)
    out2 = jax.block_until_ready(fwd2(x2))
    ref2 = jnp.maximum(x2 @ w1b + b1b, 0.0) @ w2b + b2b
    # slightly loose: K-split f32 accumulation order differs from the fused ref
    assert jnp.allclose(out2, ref2, atol=2e-3, rtol=2e-3), "tiled fallback mismatch"

    # Case 3: bf16 compute (f32 MXU accumulation) on the resident path.
    fwd3 = make_net_forward(w1, b1, w2, b2, compute_dtype=jnp.bfloat16)
    out3 = jax.block_until_ready(fwd3(x))
    assert jnp.allclose(out3, ref, atol=5e-2, rtol=5e-2), "bf16 path mismatch"

    print("KERNEL_OK")
</pallas_src>

<mosaic_0001>
module attributes {stable_mosaic.version = 11 : i64} {
  func.func @_mlp_kernel_resident(%arg0: i32, %arg1: memref<8x16xf32, #tpu.memory_space<vmem>>, %arg2: memref<16x32xf32, #tpu.memory_space<vmem>>, %arg3: memref<1x32xf32, #tpu.memory_space<vmem>>, %arg4: memref<32x4xf32, #tpu.memory_space<vmem>>, %arg5: memref<1x4xf32, #tpu.memory_space<vmem>>, %arg6: memref<8x4xf32, #tpu.memory_space<vmem>>) attributes {dimension_semantics = [#tpu.dimension_semantics<parallel>], iteration_bounds = array<i64: 2>, scalar_prefetch = 0 : i64, scratch_operands = 0 : i64, tpu.core_type = #tpu.core_type<tc>, window_params = [{transform_indices = @transform_0, window_bounds = array<i64: 8, 16>}, {pipeline_mode = #tpu.pipeline_mode<synchronous>, transform_indices = @transform_1, window_bounds = array<i64: 16, 32>}, {pipeline_mode = #tpu.pipeline_mode<synchronous>, transform_indices = @transform_2, window_bounds = array<i64: 1, 32>}, {pipeline_mode = #tpu.pipeline_mode<synchronous>, transform_indices = @transform_3, window_bounds = array<i64: 32, 4>}, {pipeline_mode = #tpu.pipeline_mode<synchronous>, transform_indices = @transform_4, window_bounds = array<i64: 1, 4>}, {transform_indices = @transform_5, window_bounds = array<i64: 8, 4>}]} {
    %c0 = arith.constant 0 : index
    %c0_0 = arith.constant 0 : index
    %0 = vector.load %arg1[%c0, %c0_0] : memref<8x16xf32, #tpu.memory_space<vmem>>, vector<8x16xf32>
    %c0_1 = arith.constant 0 : index
    %c0_2 = arith.constant 0 : index
    %1 = vector.load %arg2[%c0_1, %c0_2] : memref<16x32xf32, #tpu.memory_space<vmem>>, vector<16x32xf32>
    %cst = arith.constant dense<0.000000e+00> : vector<8x32xf32>
    %2 = tpu.matmul %0, %1, %cst {dimension_numbers = #tpu.dot_dimension_numbers<[1], [0], [0], [1], [0, 0, 1, 1], [], []>} : vector<8x16xf32>, vector<16x32xf32>, vector<8x32xf32> -> vector<8x32xf32>
    %c0_3 = arith.constant 0 : index
    %c0_4 = arith.constant 0 : index
    %3 = vector.load %arg3[%c0_3, %c0_4] : memref<1x32xf32, #tpu.memory_space<vmem>>, vector<1x32xf32>
    %4 = vector.broadcast %3 : vector<1x32xf32> to vector<8x32xf32>
    %5 = arith.addf %2, %4 : vector<8x32xf32>
    %cst_5 = arith.constant 0.000000e+00 : f32
    %6 = vector.broadcast %cst_5 : f32 to vector<8x32xf32>
    %7 = arith.maximumf %5, %6 : vector<8x32xf32>
    %c0_6 = arith.constant 0 : index
    %c0_7 = arith.constant 0 : index
    %8 = vector.load %arg4[%c0_6, %c0_7] : memref<32x4xf32, #tpu.memory_space<vmem>>, vector<32x4xf32>
    %cst_8 = arith.constant dense<0.000000e+00> : vector<8x4xf32>
    %9 = tpu.matmul %7, %8, %cst_8 {dimension_numbers = #tpu.dot_dimension_numbers<[1], [0], [0], [1], [0, 0, 1, 1], [], []>} : vector<8x32xf32>, vector<32x4xf32>, vector<8x4xf32> -> vector<8x4xf32>
    %c0_9 = arith.constant 0 : index
    %c0_10 = arith.constant 0 : index
    %10 = vector.load %arg5[%c0_9, %c0_10] : memref<1x4xf32, #tpu.memory_space<vmem>>, vector<1x4xf32>
    %11 = vector.broadcast %10 : vector<1x4xf32> to vector<8x4xf32>
    %12 = arith.addf %9, %11 : vector<8x4xf32>
    %c0_11 = arith.constant 0 : index
    %c0_12 = arith.constant 0 : index
    %13 = vector.load %arg6[%c0_11, %c0_12] : memref<8x4xf32, #tpu.memory_space<vmem>>, vector<8x4xf32>
    tpu.vector_store %arg6[%c0_11, %c0_12], %12 {strides = array<i32>} : memref<8x4xf32, #tpu.memory_space<vmem>>, vector<8x4xf32>,
    return
  }
  func.func @transform_0(%arg0: i32) -> (i32, i32) {
    %c0_i32 = arith.constant 0 : i32
    %c0_i32_0 = arith.constant 0 : i32
    return %arg0, %c0_i32 : i32, i32
  }
  func.func @transform_1(%arg0: i32) -> (i32, i32) {
    %c0_i32 = arith.constant 0 : i32
    %c0_i32_0 = arith.constant 0 : i32
    %c0_i32_1 = arith.constant 0 : i32
    return %c0_i32, %c0_i32_0 : i32, i32
  }
  func.func @transform_2(%arg0: i32) -> (i32, i32) {
    %c0_i32 = arith.constant 0 : i32
    %c0_i32_0 = arith.constant 0 : i32
    %c0_i32_1 = arith.constant 0 : i32
    return %c0_i32, %c0_i32_0 : i32, i32
  }
  func.func @transform_3(%arg0: i32) -> (i32, i32) {
    %c0_i32 = arith.constant 0 : i32
    %c0_i32_0 = arith.constant 0 : i32
    %c0_i32_1 = arith.constant 0 : i32
    return %c0_i32, %c0_i32_0 : i32, i32
  }
  func.func @transform_4(%arg0: i32) -> (i32, i32) {
    %c0_i32 = arith.constant 0 : i32
    %c0_i32_0 = arith.constant 0 : i32
    %c0_i32_1 = arith.constant 0 : i32
    return %c0_i32, %c0_i32_0 : i32, i32
  }
  func.func @transform_5(%arg0: i32) -> (i32, i32) {
    %c0_i32 = arith.constant 0 : i32
    %c0_i32_0 = arith.constant 0 : i32
    return %arg0, %c0_i32 : i32, i32
  }
}

</mosaic_0001>

<bundles_post_ra>
// kernel: forward.1
= control target key start
LH: loop header
LB: loop body
LE: loop exit
PB: predicated region body
PF: predicated region fallthrough
CT: control target
= control target key end

     0   :  { %10 = vsyncpa [#allocation3], 0  ;;  %s924_s0 = inlined_call_operand.hbm [shape: f32[16,16], index: 0, kind: input, shape index: {}]   ;;  %s925_s1 = inlined_call_operand.hbm [shape: f32[16,32], index: 1, kind: input, shape index: {}]   ;;  %s926_s2 = inlined_call_operand.vmem [shape: f32[1,32], index: 2, kind: input, shape index: {}]   ;;  %s927_s3 = inlined_call_operand.hbm [shape: f32[32,4], index: 3, kind: input, shape index: {}]   ;;  %s928_s4 = inlined_call_operand.vmem [shape: f32[1,4], index: 4, kind: input, shape index: {}]   ;;  %s929_s5 = inlined_call_operand.vmem [shape: f32[16,4], index: 5, kind: output, shape index: {}]  }
   0x1   :  { %12 = vsyncpa [#allocation3 + $0x1], 0 }
   0x2   :  { %13 = vsyncpa [#allocation5], 0  ;;  %s790_s18 = smov 0   ;;  %s792_s19 = smov 0  }
   0x3   :  { %s794_s20 = smov 0   ;;  %s796_s21 = smov 0  }
   0x4 LB: > { %s809_s22 = sadd.s32 4294967295, %s751_s21   ;;  %p39_p0 = scmp.ne.s32.totalorder %s743_s19, %s739_s18  ;;  %s751_s21 = sphi %s796_s21, %s944_s21   ;;  %s747_s20 = sphi %s794_s20, %s943_s20   ;;  %s743_s19 = sphi %s792_s19, %s942_s19   ;;  %s739_s18 = sphi %s790_s18, %s941_s18  }
   0x5   : > { %p930_p1 = scmp.eq.s32.totalorder %s809_s22, 0  ;;  %p526_p2 = scmp.ge.s32.totalorder %s751_s21, 1 }
   0x6   : > { %p160_p3 = scmp.lt.s32.totalorder %s751_s21, 3  ;;  %s753_s25 = smov [#allocation4]  }
   0x7   : > { %p817_p4 = por %p930_p1, %p39_p0  ;;  %s172_s26 = sshll.u32 %s753_s25, 4  ;;  %s173_s26 = int_to_ptr.vmem [resolvable:$true] %s172_s26 }
   0x8   : > { %p821_p5 = pnand %p526_p2, %p160_p3  ;;  %s754_s28 = smov [#allocation6]  }
   0x9   : > { %s933_s23 = scalar_select %p817_p4, 1, 0 }
   0xa   : > { %s934_s24 = scalar_select %p821_p5, 1, 0 }
   0xb   : > { %p579_p6 = pneg %p821_p5  ;;  %s188_s29 = sshll.u32 %s754_s28, 4  ;;  %s189_s29 = int_to_ptr.vmem [resolvable:$true] %s188_s29 }
   0xc   : > { %s644_s30 = scalar_lea.vmem %s173_s26, 256  ;;  %p652_p12 = scmp.lt.s32.totalorder %s173_s26, %s173_s26 }
   0xd   : > { %p829_p7 = pnand %p579_p6, %p930_p1  ;;  %p645_p9 = scmp.ne.s32.totalorder %s173_s26, %s644_s30 }
   0xe   : > { %p653_p13 = scmp.lt.s32.totalorder %s644_s30, %s644_s30 }
   0xf   : > { %p635_p8 = pneg %p829_p7 }
  0x10   : > { %p654_p0 = por %p653_p13, %p652_p12 }
  0x11   : > { %p647_p10 = pnand %p645_p9, %p635_p8 }
  0x13   : > { %p648_p11 = pneg %p647_p10 }
  0x15   : > { %p655_p2 = pnand %p654_p0, %p648_p11 }
  0x17   : > { %658 = shalt.err (!%p655_p2)
}
  0x18   : > { %s755_s6 = smov 128   ;;  %s756_s7 = smov 8  }
  0x19   : > { %582 = dma.hbm_to_vmem [thread:$0]  (!%p829_p7), %s925_s1, 256, %s173_s26, [#allocation5], %s755_s6, %s755_s6, %s756_s7  }
  0x1a   : > { %s670_s10 = scalar_lea.vmem %s189_s29, 512  ;;  %p678_p10 = scmp.lt.s32.totalorder %s189_s29, %s189_s29 }
  0x1b   : > { %p671_p3 = scmp.ne.s32.totalorder %s189_s29, %s670_s10  ;;  %p679_p1 = scmp.lt.s32.totalorder %s670_s10, %s670_s10 }
  0x1d   : > { %p673_p6 = pnand %p671_p3, %p635_p8  ;;  %p680_p12 = por %p679_p1, %p678_p10 }
  0x1f   : > { %p674_p9 = pneg %p673_p6 }
  0x21   : > { %p681_p11 = pnand %p680_p12, %p674_p9 }
  0x23   : > { %684 = shalt.err (!%p681_p11)
}
  0x24   : > { %585 = dma.hbm_to_vmem [thread:$0]  (!%p829_p7), %s927_s3, 512, %s189_s29, [#allocation5], %s755_s6, %s755_s6, %s756_s7  }
  0x25   : > { %s852_s13 = sadd.s32 1, %s751_s21   ;;  %s26_s14 = sadd.s32 1, %s747_s20 }
  0x26   : > { %s23_s15 = ssub.s32 %s751_s21, %s852_s13  ;;  %p33_p1 = scmp.ne.s32.totalorder %s747_s20, %s743_s19 }
  0x27   : > { %p24_p8 = scmp.eq.s32.totalorder %s23_s15, 0  ;;  %p34_p13 = scmp.eq.s32.totalorder %s751_s21, 0 }
  0x28   : > { %p592_p0 = scmp.lt.s32.totalorder %s751_s21, 2  ;;  %s205_s16 = sand.u32 1, %s747_s20  }
  0x29   : > { %s863_s17 = scalar_select %p24_p8, %s747_s20, %s26_s14  }
  0x2a   : > { %p35_p2 = por %p34_p13, %p33_p1  ;;  %s530_s18 = sshll.u32 %s205_s16, 3 }
  0x2b   : > { %s531_s25 = sshll.u32 %s751_s21, 7  ;;  %s209_s29 = scalar_lea.vmem [#allocation2], %s530_s18 }
  0x2c   : > { %s869_s28 = scalar_lea.hbm %s924_s0, %s531_s25  ;;  %s216_s30 = sshll.u32 %s209_s29, 4  ;;  %s217_s30 = int_to_ptr.vmem [resolvable:$true] %s216_s30 }
  0x2d   : > { %p871_p7 = pnand %p592_p0, %p35_p2  ;;  %s206_s7 = scalar_lea.sflag [#allocation3], %s205_s16 }
  0x2e   : > { %s685_s8 = scalar_lea.hbm %s869_s28, 128  ;;  %s690_s10 = scalar_lea.hbm %s924_s0, 256 }
  0x2f   : > { %p686_p3 = scmp.ne.s32.totalorder %s869_s28, %s685_s8  ;;  %p687_p6 = pneg %p871_p7 }
  0x30   : > { %p691_p12 = scmp.lt.s32.totalorder %s869_s28, %s924_s0  ;;  %p692_p11 = scmp.lt.s32.totalorder %s690_s10, %s685_s8 }
  0x31   : > { %p688_p9 = pnand %p687_p6, %p686_p3 }
  0x32   : > { %p693_p1 = por %p692_p11, %p691_p12 }
  0x33   : > { %p689_p10 = pneg %p688_p9 }
  0x35   : > { %p694_p8 = pnand %p693_p1, %p689_p10 }
  0x37   : > { %697 = shalt.err (!%p694_p8)
}
  0x38   : > { %s698_s14 = scalar_lea.vmem %s217_s30, 128  ;;  %s757_s15 = smov [#allocation2]  }
  0x39   : > { %p699_p13 = scmp.ne.s32.totalorder %s217_s30, %s698_s14  ;;  %s703_s16 = sshll.u32 %s757_s15, 4  ;;  %s704_s16 = int_to_ptr.vmem [resolvable:$false] %s703_s16 }
  0x3a   : > { %s705_s18 = scalar_lea.vmem %s704_s16, 256  ;;  %p706_p3 = scmp.lt.s32.totalorder %s217_s30, %s704_s16 }
  0x3b   : > { %p701_p0 = pnand %p699_p13, %p687_p6  ;;  %p707_p9 = scmp.lt.s32.totalorder %s705_s18, %s698_s14 }
  0x3d   : > { %p702_p2 = pneg %p701_p0  ;;  %p708_p4 = por %p707_p9, %p706_p3 }
  0x3f   : > { %p709_p5 = pnand %p708_p4, %p702_p2 }
  0x41   : > { %712 = shalt.err (!%p709_p5)
}
  0x42   : > { %589 = dma.hbm_to_vmem [thread:$0]  (!%p871_p7), %s869_s28, 128, %s217_s30, %s206_s7  }
  0x43   : > { %p937_p10 = scmp.ne.s32.totalorder %s934_s24, 0 }
  0x44   : > { %s227_s25 = sand.u32 (!%p937_p10), 1, %s743_s19   ;;  %p938_p6 = scmp.ne.s32.totalorder (!%p937_p10), %s933_s23, 0 }
  0x45   : > { %225 = sbr.rel (%p937_p10) target bundleno = 477 (0x1dd), region = 40  ;;  %s533_s26 = sshll.u32 (!%p937_p10), %s227_s25, 3 }
  0x46   : > { %s228_s27 = scalar_lea.sflag (!%p937_p10), [#allocation3], %s227_s25  ;;  %s231_s29 = scalar_lea.vmem (!%p937_p10), [#allocation2], %s533_s26 }
  0x4a   : > { %730 = dma.done.wait (%p938_p6), %s228_s27, 128  }
  0x4b   : > { %732 = vsyncadd (%p938_p6), %s228_s27, 4294967168  ;;  %p939_p4 = scmp.eq.s32.totalorder %s809_s22, 0 }
  0x4d   : > { %734 = dma.done.wait (%p939_p4), [#allocation5], 768   ;;  %p940_p5 = pmov %p939_p4 }
  0x4e   : > { %v758_v0 = vmov 0.0   ;;  %vm759_vm0 = vmmov 0   ;;  %v271_v1 = vld [vmem:[#allocation4 + $0x8] sm:$0xff]  ;;  %v270_v2 = vld [vmem:[#allocation4] sm:$0xff]  ;;  %v269_v3 = vld [vmem:[%s231_s29] sm:$0xff]  ;;  %vm279_vm1 = vcmask 130048  }
  0x4f   : > { %736 = vsyncadd (%p940_p5), [#allocation5], 4294966528  ;;  %551 = vmatprep.subr.mxu0 %v758_v0  ;;  %555 = vmatprep.mubr.msk.f32.mxu0 %vm759_vm0, %v758_v0  ;;  %v357_v4 = vld [vmem:[#allocation6 + $0x18] sm:$0xff]  ;;  %v356_v5 = vld [vmem:[#allocation6 + $0x10] sm:$0xff]  ;;  %vm365_vm2 = vcmask 261120   ;;  %p265_p7 = scmp.lt.s32.totalorder %s809_s22, 1 }
  0x50   : > { %558 = vmatprep.subr.mxu1 %v758_v0  ;;  %566 = vmatprep.mubr.msk.f32.mxu1 %vm759_vm0, %v758_v0  ;;  %v355_v6 = vld [vmem:[#allocation6 + $0x8] sm:$0xff]  ;;  %v354_v7 = vld [vmem:[#allocation6] sm:$0xff]  ;;  %vm439_vm3 = vcmask 31744  }
  0x51   : > { %552 = vmatpush3.msra.mxu0 %v271_v1  ;;  %559 = vmatpush3.msra.mxu1 %v357_v4  ;;  %v537_v8 = vld [vmem:[%s926_s2] ss:$0 sm:$0xff]  ;;  %s946_s22 = smov (!%p265_p7, %s809_s22), 1 }
  0x52   : > { %553 = vmatprep.subr.mxu0 %v758_v0  ;;  %560 = vmatprep.subr.mxu1 %v758_v0  ;;  %s536_s28 = sshll.u32 %s946_s22, 3  ;;  %v539_v13 = vld [vmem:[%s928_s4] ss:$0 sm:$0xff] }
  0x53   : > { %554 = vmatpush3.msra.mxu0 %v270_v2  ;;  %561 = vmatpush3.msra.mxu1 %v356_v5  ;;  %s268_s21 = scalar_lea.vmem %s929_s5, %s536_s28 }
  0x54   : > { %556 = vmatmul.mubr.msk.f32.vlgmr.msra.gmra.mxu0 %vm279_vm1, %v269_v3  ;;  %562 = vmatprep.subr.mxu1 %v758_v0 }
  0x55   : > { %563 = vmatpush3.msra.mxu1 %v355_v6 }
  0x56   : > { %564 = vmatprep.subr.mxu1 %v758_v0 }
  0x57   : > { %565 = vmatpush3.msra.mxu1 %v354_v7 }
 0x114   : > { %v349_v9 = vpop.f32.mrf.mxu0 }
 0x115   : > { %v350_v10 = vadd.f32 %v537_v8, %v349_v9 }
 0x116   : > { %v557_v11 = vpop.f32.mrf.mxu0 }
 0x117   : > { %v353_v12 = vmax.f32 %v350_v10, 0.0 }
 0x119   : > { %567 = vmatmul.mubr.msk.f32.vlgmr.msra.gmra.mxu1 %vm365_vm2, %v353_v12 }
 0x1d9   : > { %v435_v14 = vpop.f32.mrf.mxu1 }
 0x1da   : > { %v436_v15 = vadd.f32 %v539_v13, %v435_v14 }
 0x1db   : > { %v568_v16 = vpop.f32.mrf.mxu1 }
 0x1dc   : > { %440 = vst.msk [vmem:[%s268_s21] sm:$0xff] %vm439_vm3, %v436_v15 }
 0x1dd PF: > { %p16_p12 = scmp.ge.s32.totalorder %s852_s13, 4   ;;  %s941_s18 = smov %s743_s19 }
 0x1de   : > { %s942_s19 = smov %s747_s20  ;;  %s943_s20 = smov %s863_s17 }
 0x1df   : > { %s944_s21 = smov %s852_s13  ;;  %18 = sbr.rel (!%p16_p12) target bundleno = 4 (0x4), region = 88 }
 0x1e4   :  { %460 = vsyncpa [#allocation3], 1 }
 0x1e5   :  { %462 = vsyncpa [#allocation3 + $0x1], 1 }
 0x1e6   :  { %463 = vsyncpa [#allocation5], 1 }

</bundles_post_ra>
